<compile_context>
chip_gen: v5e
topology: v5e:2x2
jax: 0.10.0
libtpu: 0.0.40
codegen_flags: <defaults>
</compile_context>

<pallas_src>
import functools
import math

import jax
import jax.numpy as jnp
from jax.experimental import pallas as pl
from jax.experimental.pallas import tpu as pltpu


def _policy_value_kernel(x_ref, wc1_ref, bc1_ref, wc2_ref, bc2_ref,
                         wo1_ref, bo1_ref, wo2_ref, bo2_ref, out_ref,
                         *, s_valid, matmul_dtype):
    """One grid step: a (bt, S, E) batch tile -> a (1, 1, bt) output slab."""
    bt, s, e = x_ref.shape

    # X is DMA'd as f32 (single HBM read); reshape while still f32 (free
    # sublane merge, S is a multiple of 8) then cast on the VPU for the MXU.
    x = x_ref[...]                                            # (bt, S, E) f32
    x2d = x.reshape(bt * s, e).astype(matmul_dtype)           # (bt*S, E)

    # Collapse scorer MLP E -> Hc, flattened so the MXU sees M = bt*S rows.
    h = jnp.dot(x2d, wc1_ref[...],
                preferred_element_type=jnp.float32) + bc1_ref[...]
    h = jnp.maximum(h, 0.0).reshape(bt, s, -1)                # (bt, S, Hc) f32

    # Hc -> 1 as a VPU multiply + lane reduce (wc2 is a (1, Hc) row vector).
    scores = jnp.sum(h * wc2_ref[...], axis=-1) + bc2_ref[0, 0]   # (bt, S)

    # Mask padded positions (S rounded up to a sublane multiple) out of softmax.
    if s_valid != s:
        pos = jax.lax.broadcasted_iota(jnp.int32, scores.shape, 1)
        scores = jnp.where(pos < s_valid, scores, -jnp.inf)

    # Softmax over positions, f32 stats, exact reciprocal.
    m = jnp.max(scores, axis=-1, keepdims=True)               # (bt, 1)
    ex = jnp.exp(scores - m)                                  # (bt, S)
    denom = jnp.sum(ex, axis=-1, keepdims=True)               # (bt, 1)
    w = ex * pl.reciprocal(denom, approx=False)               # (bt, S) f32

    # Pooling: VPU multiply + cross-sublane reduce, all f32 (no M=1 MXU
    # passes; the softmax weights are never quantized).
    pooled = jnp.sum(w[:, :, None] * x, axis=1)               # (bt, E) f32

    # Output FFN E -> Ho -> 1.
    h2 = jnp.dot(pooled.astype(matmul_dtype), wo1_ref[...],
                 preferred_element_type=jnp.float32) + bo1_ref[...]
    h2 = jnp.maximum(h2, 0.0)                                 # (bt, Ho) f32
    out_col = (jnp.sum(h2 * wo2_ref[...], axis=-1, keepdims=True)
               + bo2_ref[0, 0])                               # (bt, 1)

    # Lane-oriented store: batch lives on the lane axis of the (1, 1, bt)
    # block (tiny XLU transpose instead of a last-dim-1 masked store).
    out_ref[...] = out_col.T[None, :, :].astype(out_ref.dtype)


def _round_up(x, m):
    return -(-x // m) * m


def _plan_batch_tiles(B, S, E, Hc, Ho, mm_itemsize, vmem_budget_bytes):
    """Pick (B_pad, bt): bt batch rows per grid step, grid = B_pad // bt >= 2.

    Budgets everything resident in VMEM per TensorCore (double-buffered f32 X
    tile, the in-kernel MXU-dtype copy of x, the f32 activations, softmax
    temporaries and the w*x product) -- not just the X slab -- so the tile
    stays inside v7x's 64 MiB/TC VMEM and well under the requested limit on
    v5e/v6e.  Weights/biases are single-buffered and tiny, so ignored.
    """
    per_row = (2 * S * E * 4            # double-buffered f32 X tile
               + S * E * mm_itemsize    # in-kernel cast of x for the MXU
               + S * E * 4              # f32 (w * x) product before the reduce
               + S * Hc * 4             # f32 scorer activation h
               + 6 * S * 4              # scores / exp / softmax weights + slack
               + 8 * (E + Hc + Ho))     # pooled / h2 rows
    bt_fit = max(8, (vmem_budget_bytes // per_row) // 8 * 8)

    # Batch-tile granularity: a multiple of 8 sublanes and, when it fits, big
    # enough that bt*S is a multiple of 128 so the scorer matmul's M dimension
    # fills MXU passes on every generation (128 on v5e, 256 on v6e/v7x).
    b = 128 // math.gcd(S, 128)
    g = (8 * b) // math.gcd(8, b)
    if g > bt_fit:
        g = 8

    # >= 2 grid steps so "parallel" can shard the batch axis across both v7x
    # TensorCores (harmless on single-TC v5e/v6e).
    B_pad = max(_round_up(B, g), 2 * g)
    bt = max(g, (min(bt_fit, B_pad // 2) // g) * g)
    B_pad = _round_up(B_pad, bt)
    return B_pad, bt


def policy_value_forward(x, params, *, matmul_dtype=jnp.bfloat16,
                         vmem_budget_bytes=28 << 20,
                         vmem_limit_bytes=48 << 20):
    """x: (B, D1, ..., Dk, E) -> (B, 1)."""
    wc1, bc1, wc2, bc2, wo1, bo1, wo2, bo2 = params
    B = x.shape[0]
    E = x.shape[-1]
    S = 1
    for d in x.shape[1:-1]:
        S *= d
    Hc = wc1.shape[-1]
    Ho = wo1.shape[-1]
    itemsize = jnp.dtype(matmul_dtype).itemsize

    # Flatten positions (metadata-only for a contiguous array: no HBM pass).
    x3 = x.reshape(B, S, E)

    # Pad S to a sublane multiple so the in-kernel (bt*S,E)<->(bt,S,.) reshapes
    # are pure layout ops; padded positions are masked to -inf before softmax.
    s_valid = S
    S_pad = _round_up(S, 8)
    if S_pad != S:
        x3 = jnp.pad(x3, ((0, 0), (0, S_pad - S), (0, 0)))

    B_pad, bt = _plan_batch_tiles(B, S_pad, E, Hc, Ho, itemsize,
                                  vmem_budget_bytes)
    if B_pad != B:
        # Zero rows see a uniform softmax -> finite garbage, sliced off below.
        # At realistic batch sizes B is already tile-aligned and this pad
        # (an extra HBM pass on X) disappears.
        x3 = jnp.pad(x3, ((0, B_pad - B), (0, 0), (0, 0)))
    grid_steps = B_pad // bt
    # TODO(synk): if even bt=8 exceeds the VMEM budget (very large S*E), add an
    # S-chunk grid axis ("arbitrary", last) with an online-softmax accumulator.

    # Small weights: casting these in the wrapper is negligible HBM traffic.
    wc1m = wc1.astype(matmul_dtype)                       # (E, Hc)
    wo1m = wo1.astype(matmul_dtype)                       # (E, Ho)
    bc1f = bc1.reshape(1, -1).astype(jnp.float32)         # (1, Hc)
    bo1f = bo1.reshape(1, -1).astype(jnp.float32)         # (1, Ho)
    wc2_row = wc2.reshape(1, -1).astype(jnp.float32)      # (1, Hc) row vector
    wo2_row = wo2.reshape(1, -1).astype(jnp.float32)      # (1, Ho) row vector
    bc2f = bc2.reshape(1, 1).astype(jnp.float32)          # SMEM scalar
    bo2f = bo2.reshape(1, 1).astype(jnp.float32)          # SMEM scalar

    def const_spec(arr):
        # Constant operands: the block never moves, so one VMEM buffer is
        # enough (frees VMEM for a bigger X tile).
        return pl.BlockSpec(arr.shape, lambda b: (0, 0),
                            pipeline_mode=pl.Buffered(1))

    smem_spec = pl.BlockSpec(memory_space=pltpu.MemorySpace.SMEM)

    flops = (2 * B_pad * S_pad * E * Hc        # scorer matmul
             + 3 * B_pad * S_pad * Hc          # relu + Hc->1 reduce
             + 6 * B_pad * S_pad               # softmax arithmetic
             + 2 * B_pad * S_pad * E           # pooling multiply + reduce
             + 2 * B_pad * E * Ho              # output matmul
             + 3 * B_pad * Ho)                 # relu + Ho->1 reduce
    bytes_accessed = (B_pad * S_pad * E * 4 + B_pad * 4
                      + (E * Hc + E * Ho) * itemsize
                      + (2 * Hc + 2 * Ho + 2) * 4)

    kernel = functools.partial(_policy_value_kernel,
                               s_valid=s_valid, matmul_dtype=matmul_dtype)

    out = pl.pallas_call(
        kernel,
        out_shape=jax.ShapeDtypeStruct((grid_steps, 1, bt), jnp.float32),
        grid=(grid_steps,),
        in_specs=[
            pl.BlockSpec((bt, S_pad, E), lambda b: (b, 0, 0)),   # X batch tile
            const_spec(wc1m), const_spec(bc1f), const_spec(wc2_row),
            smem_spec,                                           # bc2 scalar
            const_spec(wo1m), const_spec(bo1f), const_spec(wo2_row),
            smem_spec,                                           # bo2 scalar
        ],
        # Batch on the lane axis of each (1, 1, bt) output block; block last
        # two dims equal the full array dims, so any bt is legal.
        out_specs=pl.BlockSpec((1, 1, bt), lambda b: (b, 0, 0)),
        compiler_params=pltpu.CompilerParams(
            dimension_semantics=("parallel",),
            vmem_limit_bytes=int(vmem_limit_bytes)),
        cost_estimate=pl.CostEstimate(flops=int(flops),
                                      transcendentals=int(B_pad * S_pad),
                                      bytes_accessed=int(bytes_accessed)),
    )(x3, wc1m, bc1f, wc2_row, bc2f, wo1m, bo1f, wo2_row, bo2f)

    return out.reshape(B_pad, 1)[:B]


def init_params(key, embedding_dim, collapse_hidden, output_hidden):
    """Deterministic synthetic parameters (shapes follow the module __init__)."""
    ks = jax.random.split(key, 8)

    def lin(k, fan_in, fan_out):
        return jax.random.normal(k, (fan_in, fan_out), jnp.float32) / jnp.sqrt(fan_in)

    wc1 = lin(ks[0], embedding_dim, collapse_hidden)
    bc1 = jax.random.normal(ks[1], (1, collapse_hidden), jnp.float32) * 0.01
    wc2 = lin(ks[2], collapse_hidden, 1)
    bc2 = jax.random.normal(ks[3], (1, 1), jnp.float32) * 0.01
    wo1 = lin(ks[4], embedding_dim, output_hidden)
    bo1 = jax.random.normal(ks[5], (1, output_hidden), jnp.float32) * 0.01
    wo2 = lin(ks[6], output_hidden, 1)
    bo2 = jax.random.normal(ks[7], (1, 1), jnp.float32) * 0.01
    return (wc1, bc1, wc2, bc2, wo1, bo1, wo2, bo2)


def policy_value_ref(x, params):
    """Pure-JAX reference for correctness checking."""
    wc1, bc1, wc2, bc2, wo1, bo1, wo2, bo2 = params
    B, E = x.shape[0], x.shape[-1]
    x3 = x.reshape(B, -1, E).astype(jnp.float32)
    h = jnp.maximum(x3 @ wc1 + bc1, 0.0)
    scores = (h @ wc2 + bc2)[..., 0]                      # (B, S)
    w = jax.nn.softmax(scores, axis=-1)
    pooled = jnp.einsum("bs,bse->be", w, x3)              # (B, E)
    h2 = jnp.maximum(pooled @ wo1 + bo1, 0.0)
    return h2 @ wo2 + bo2                                 # (B, 1)


if __name__ == "__main__":
    B, D1, D2, E = 2, 2, 4, 32       # X: (batch, D1, D2, embedding_dim), S = 8
    Hc, Ho = 32, 32                  # collapse / output hidden sizes

    key = jax.random.PRNGKey(0)
    kx, kp = jax.random.split(key)
    x = jax.random.normal(kx, (B, D1, D2, E), jnp.float32)
    params = init_params(kp, E, Hc, Ho)

    ref = policy_value_ref(x, params)

    # f32 MXU operands: tight check.
    out_f32 = jax.block_until_ready(
        policy_value_forward(x, params, matmul_dtype=jnp.float32))
    assert out_f32.shape == (B, 1)
    assert jnp.allclose(out_f32, ref, atol=2e-3, rtol=2e-3), (out_f32, ref)

    # Default path (bf16 MXU operands, f32 accumulation): looser tolerance.
    out_bf16 = jax.block_until_ready(policy_value_forward(x, params))
    assert out_bf16.shape == (B, 1)
    assert jnp.allclose(out_bf16, ref, atol=3e-2, rtol=3e-2), (out_bf16, ref)

    print("KERNEL_OK")
</pallas_src>

<mosaic_0001>
module attributes {stable_mosaic.version = 11 : i64} {
  func.func @_policy_value_kernel(%arg0: i32, %arg1: memref<16x8x32xf32, #tpu.memory_space<vmem>>, %arg2: memref<32x32xf32, #tpu.memory_space<vmem>>, %arg3: memref<1x32xf32, #tpu.memory_space<vmem>>, %arg4: memref<1x32xf32, #tpu.memory_space<vmem>>, %arg5: memref<1x1xf32, #tpu.memory_space<smem>>, %arg6: memref<32x32xf32, #tpu.memory_space<vmem>>, %arg7: memref<1x32xf32, #tpu.memory_space<vmem>>, %arg8: memref<1x32xf32, #tpu.memory_space<vmem>>, %arg9: memref<1x1xf32, #tpu.memory_space<smem>>, %arg10: memref<1x1x16xf32, #tpu.memory_space<vmem>>) attributes {dimension_semantics = [#tpu.dimension_semantics<parallel>], iteration_bounds = array<i64: 2>, scalar_prefetch = 0 : i64, scratch_operands = 0 : i64, tpu.core_type = #tpu.core_type<tc>, window_params = [{transform_indices = @transform_0, window_bounds = array<i64: 16, 8, 32>}, {pipeline_mode = #tpu.pipeline_mode<synchronous>, transform_indices = @transform_1, window_bounds = array<i64: 32, 32>}, {pipeline_mode = #tpu.pipeline_mode<synchronous>, transform_indices = @transform_2, window_bounds = array<i64: 1, 32>}, {pipeline_mode = #tpu.pipeline_mode<synchronous>, transform_indices = @transform_3, window_bounds = array<i64: 1, 32>}, {transform_indices = @transform_4, window_bounds = array<i64: 1, 1>}, {pipeline_mode = #tpu.pipeline_mode<synchronous>, transform_indices = @transform_5, window_bounds = array<i64: 32, 32>}, {pipeline_mode = #tpu.pipeline_mode<synchronous>, transform_indices = @transform_6, window_bounds = array<i64: 1, 32>}, {pipeline_mode = #tpu.pipeline_mode<synchronous>, transform_indices = @transform_7, window_bounds = array<i64: 1, 32>}, {transform_indices = @transform_8, window_bounds = array<i64: 1, 1>}, {transform_indices = @transform_9, window_bounds = array<i64: 1, 1, 16>}]} {
    %c0 = arith.constant 0 : index
    %c0_0 = arith.constant 0 : index
    %c0_1 = arith.constant 0 : index
    %0 = vector.load %arg1[%c0, %c0_0, %c0_1] : memref<16x8x32xf32, #tpu.memory_space<vmem>>, vector<16x8x32xf32>
    %1 = vector.shape_cast %0 : vector<16x8x32xf32> to vector<128x32xf32>
    %c0_2 = arith.constant 0 : index
    %c0_3 = arith.constant 0 : index
    %2 = vector.load %arg2[%c0_2, %c0_3] : memref<32x32xf32, #tpu.memory_space<vmem>>, vector<32x32xf32>
    %cst = arith.constant dense<0.000000e+00> : vector<128x32xf32>
    %3 = tpu.matmul %1, %2, %cst {dimension_numbers = #tpu.dot_dimension_numbers<[1], [0], [0], [1], [0, 0, 1, 1], [], []>} : vector<128x32xf32>, vector<32x32xf32>, vector<128x32xf32> -> vector<128x32xf32>
    %c0_4 = arith.constant 0 : index
    %c0_5 = arith.constant 0 : index
    %4 = vector.load %arg3[%c0_4, %c0_5] : memref<1x32xf32, #tpu.memory_space<vmem>>, vector<1x32xf32>
    %5 = vector.broadcast %4 : vector<1x32xf32> to vector<128x32xf32>
    %6 = arith.addf %3, %5 : vector<128x32xf32>
    %cst_6 = arith.constant 0.000000e+00 : f32
    %7 = vector.broadcast %cst_6 : f32 to vector<128x32xf32>
    %8 = arith.maximumf %6, %7 : vector<128x32xf32>
    %9 = vector.shape_cast %8 : vector<128x32xf32> to vector<16x8x32xf32>
    %c0_7 = arith.constant 0 : index
    %c0_8 = arith.constant 0 : index
    %10 = vector.load %arg4[%c0_7, %c0_8] : memref<1x32xf32, #tpu.memory_space<vmem>>, vector<1x32xf32>
    %11 = vector.shape_cast %10 : vector<1x32xf32> to vector<1x1x32xf32>
    %12 = vector.broadcast %11 : vector<1x1x32xf32> to vector<16x8x32xf32>
    %13 = arith.mulf %9, %12 : vector<16x8x32xf32>
    %cst_9 = arith.constant dense<0.000000e+00> : vector<16x8xf32>
    %14 = vector.multi_reduction <add>, %13, %cst_9 [2] : vector<16x8x32xf32> to vector<16x8xf32>
    %c0_10 = arith.constant 0 : index
    %c0_11 = arith.constant 0 : index
    %15 = memref.load %arg5[%c0_10, %c0_11] : memref<1x1xf32, #tpu.memory_space<smem>>
    %16 = vector.broadcast %15 : f32 to vector<16x8xf32>
    %17 = arith.addf %14, %16 : vector<16x8xf32>
    %cst_12 = arith.constant dense<0xFF800000> : vector<16xf32>
    %18 = vector.multi_reduction <maximumf>, %17, %cst_12 [1] : vector<16x8xf32> to vector<16xf32>
    %19 = vector.shape_cast %18 : vector<16xf32> to vector<16x1xf32>
    %20 = vector.broadcast %19 : vector<16x1xf32> to vector<16x8xf32>
    %21 = arith.subf %17, %20 : vector<16x8xf32>
    %22 = math.exp %21 : vector<16x8xf32>
    %cst_13 = arith.constant dense<0.000000e+00> : vector<16xf32>
    %23 = vector.multi_reduction <add>, %22, %cst_13 [1] : vector<16x8xf32> to vector<16xf32>
    %24 = vector.shape_cast %23 : vector<16xf32> to vector<16x1xf32>
    %25 = tpu.reciprocal %24 : vector<16x1xf32> -> vector<16x1xf32>
    %26 = vector.broadcast %25 : vector<16x1xf32> to vector<16x8xf32>
    %27 = arith.mulf %22, %26 : vector<16x8xf32>
    %28 = vector.shape_cast %27 : vector<16x8xf32> to vector<16x8x1xf32>
    %29 = vector.broadcast %28 : vector<16x8x1xf32> to vector<16x8x32xf32>
    %30 = arith.mulf %29, %0 : vector<16x8x32xf32>
    %cst_14 = arith.constant dense<0.000000e+00> : vector<16x32xf32>
    %31 = vector.multi_reduction <add>, %30, %cst_14 [1] : vector<16x8x32xf32> to vector<16x32xf32>
    %c0_15 = arith.constant 0 : index
    %c0_16 = arith.constant 0 : index
    %32 = vector.load %arg6[%c0_15, %c0_16] : memref<32x32xf32, #tpu.memory_space<vmem>>, vector<32x32xf32>
    %cst_17 = arith.constant dense<0.000000e+00> : vector<16x32xf32>
    %33 = tpu.matmul %31, %32, %cst_17 {dimension_numbers = #tpu.dot_dimension_numbers<[1], [0], [0], [1], [0, 0, 1, 1], [], []>} : vector<16x32xf32>, vector<32x32xf32>, vector<16x32xf32> -> vector<16x32xf32>
    %c0_18 = arith.constant 0 : index
    %c0_19 = arith.constant 0 : index
    %34 = vector.load %arg7[%c0_18, %c0_19] : memref<1x32xf32, #tpu.memory_space<vmem>>, vector<1x32xf32>
    %35 = vector.broadcast %34 : vector<1x32xf32> to vector<16x32xf32>
    %36 = arith.addf %33, %35 : vector<16x32xf32>
    %cst_20 = arith.constant 0.000000e+00 : f32
    %37 = vector.broadcast %cst_20 : f32 to vector<16x32xf32>
    %38 = arith.maximumf %36, %37 : vector<16x32xf32>
    %c0_21 = arith.constant 0 : index
    %c0_22 = arith.constant 0 : index
    %39 = vector.load %arg8[%c0_21, %c0_22] : memref<1x32xf32, #tpu.memory_space<vmem>>, vector<1x32xf32>
    %40 = vector.broadcast %39 : vector<1x32xf32> to vector<16x32xf32>
    %41 = arith.mulf %38, %40 : vector<16x32xf32>
    %cst_23 = arith.constant dense<0.000000e+00> : vector<16xf32>
    %42 = vector.multi_reduction <add>, %41, %cst_23 [1] : vector<16x32xf32> to vector<16xf32>
    %43 = vector.shape_cast %42 : vector<16xf32> to vector<16x1xf32>
    %c0_24 = arith.constant 0 : index
    %c0_25 = arith.constant 0 : index
    %44 = memref.load %arg9[%c0_24, %c0_25] : memref<1x1xf32, #tpu.memory_space<smem>>
    %45 = vector.broadcast %44 : f32 to vector<16x1xf32>
    %46 = arith.addf %43, %45 : vector<16x1xf32>
    %47 = tpu.transpose %46, [1, 0] : vector<16x1xf32> -> vector<1x16xf32>
    %48 = vector.shape_cast %47 : vector<1x16xf32> to vector<1x1x16xf32>
    %c0_26 = arith.constant 0 : index
    %c0_27 = arith.constant 0 : index
    %c0_28 = arith.constant 0 : index
    %49 = vector.load %arg10[%c0_26, %c0_27, %c0_28] : memref<1x1x16xf32, #tpu.memory_space<vmem>>, vector<1x1x16xf32>
    tpu.vector_store %arg10[%c0_26, %c0_27, %c0_28], %48 {strides = array<i32>} : memref<1x1x16xf32, #tpu.memory_space<vmem>>, vector<1x1x16xf32>,
    return
  }
  func.func @transform_0(%arg0: i32) -> (i32, i32, i32) {
    %c0_i32 = arith.constant 0 : i32
    %c0_i32_0 = arith.constant 0 : i32
    %c0_i32_1 = arith.constant 0 : i32
    return %arg0, %c0_i32, %c0_i32_0 : i32, i32, i32
  }
  func.func @transform_1(%arg0: i32) -> (i32, i32) {
    %c0_i32 = arith.constant 0 : i32
    %c0_i32_0 = arith.constant 0 : i32
    %c0_i32_1 = arith.constant 0 : i32
    return %c0_i32, %c0_i32_0 : i32, i32
  }
  func.func @transform_2(%arg0: i32) -> (i32, i32) {
    %c0_i32 = arith.constant 0 : i32
    %c0_i32_0 = arith.constant 0 : i32
    %c0_i32_1 = arith.constant 0 : i32
    return %c0_i32, %c0_i32_0 : i32, i32
  }
  func.func @transform_3(%arg0: i32) -> (i32, i32) {
    %c0_i32 = arith.constant 0 : i32
    %c0_i32_0 = arith.constant 0 : i32
    %c0_i32_1 = arith.constant 0 : i32
    return %c0_i32, %c0_i32_0 : i32, i32
  }
  func.func @transform_4(%arg0: i32) -> (i32, i32) {
    %c0_i32 = arith.constant 0 : i32
    %c0_i32_0 = arith.constant 0 : i32
    %c0_i32_1 = arith.constant 0 : i32
    return %c0_i32, %c0_i32_0 : i32, i32
  }
  func.func @transform_5(%arg0: i32) -> (i32, i32) {
    %c0_i32 = arith.constant 0 : i32
    %c0_i32_0 = arith.constant 0 : i32
    %c0_i32_1 = arith.constant 0 : i32
    return %c0_i32, %c0_i32_0 : i32, i32
  }
  func.func @transform_6(%arg0: i32) -> (i32, i32) {
    %c0_i32 = arith.constant 0 : i32
    %c0_i32_0 = arith.constant 0 : i32
    %c0_i32_1 = arith.constant 0 : i32
    return %c0_i32, %c0_i32_0 : i32, i32
  }
  func.func @transform_7(%arg0: i32) -> (i32, i32) {
    %c0_i32 = arith.constant 0 : i32
    %c0_i32_0 = arith.constant 0 : i32
    %c0_i32_1 = arith.constant 0 : i32
    return %c0_i32, %c0_i32_0 : i32, i32
  }
  func.func @transform_8(%arg0: i32) -> (i32, i32) {
    %c0_i32 = arith.constant 0 : i32
    %c0_i32_0 = arith.constant 0 : i32
    %c0_i32_1 = arith.constant 0 : i32
    return %c0_i32, %c0_i32_0 : i32, i32
  }
  func.func @transform_9(%arg0: i32) -> (i32, i32, i32) {
    %c0_i32 = arith.constant 0 : i32
    %c0_i32_0 = arith.constant 0 : i32
    %c0_i32_1 = arith.constant 0 : i32
    return %arg0, %c0_i32, %c0_i32_0 : i32, i32, i32
  }
}

</mosaic_0001>

<bundles_post_ra>
// kernel: tpu_custom_call.1
= control target key start
LH: loop header
LB: loop body
LE: loop exit
PB: predicated region body
PF: predicated region fallthrough
CT: control target
= control target key end

     0   :  { %s2288_s0 = inlined_call_operand.hbm [shape: f32[32,8,32], index: 0, kind: input, shape index: {}]   ;;  %s2289_s1 = inlined_call_operand.hbm [shape: f32[32,32], index: 1, kind: input, shape index: {}]   ;;  %s2290_s2 = inlined_call_operand.vmem [shape: f32[1,32], index: 2, kind: input, shape index: {}]   ;;  %s2291_s3 = inlined_call_operand.vmem [shape: f32[1,32], index: 3, kind: input, shape index: {}]   ;;  %s2292_s4 = inlined_call_operand.<no memory space> [shape: f32[1,1], index: 4, kind: input, shape index: {}]   ;;  %s2293_s5 = inlined_call_operand.hbm [shape: f32[32,32], index: 5, kind: input, shape index: {}]   ;;  %s2294_s6 = inlined_call_operand.vmem [shape: f32[1,32], index: 6, kind: input, shape index: {}]   ;;  %s2295_s7 = inlined_call_operand.vmem [shape: f32[1,32], index: 7, kind: input, shape index: {}]   ;;  %s2296_s8 = inlined_call_operand.<no memory space> [shape: f32[1,1], index: 8, kind: input, shape index: {}]   ;;  %s2297_s9 = inlined_call_operand.hbm [shape: f32[2,1,16], index: 9, kind: output, shape index: {}]  }
   0x1   :  { %2300 = sst [smem:[#allocation14_spill]] %s2289_s1 }
   0x2   :  { %14 = sst [smem:[#allocation2]] %s2292_s4 }
   0x3   :  { %15 = sst [smem:[#allocation3]] %s2296_s8 }
   0x4   :  { %16 = vsyncpa [#allocation5], 0 }
   0x5   :  { %18 = vsyncpa [#allocation5 + $0x1], 0 }
   0x6   :  { %19 = vsyncpa [#allocation8], 0 }
   0x7   :  { %20 = vsyncpa [#allocation6], 0 }
   0x8   :  { %22 = vsyncpa [#allocation6 + $0x1], 0  ;;  %s1765_s13 = smov 0   ;;  %s1767_s14 = smov 0  }
   0x9   :  { %s1769_s15 = smov 0   ;;  %s1771_s16 = smov 0  }
   0xa LB: > { %s1786_s4 = sadd.s32 4294967295, %s1702_s16   ;;  %s1377_s8 = sadd.s32 4294967294, %s1702_s16   ;;  %s1702_s16 = sphi %s1771_s16, %s2313_s16   ;;  %s1698_s15 = sphi %s1769_s15, %s2312_s15   ;;  %s1694_s14 = sphi %s1767_s14, %s2311_s14   ;;  %s1690_s13 = sphi %s1765_s13, %s2310_s13  }
   0xb   : > { %p48_p0 = scmp.ne.s32.totalorder %s1694_s14, %s1690_s13  ;;  %p49_p1 = scmp.eq.s32.totalorder %s1786_s4, 0 }
   0xc   : > { %p240_p2 = scmp.eq.s32.totalorder %s1786_s4, 1  ;;  %p246_p3 = scmp.eq.s32.totalorder %s1377_s8, 1 }
   0xd   : > { %p1795_p4 = por %p49_p1, %p48_p0  ;;  %p1378_p5 = scmp.ge.s32.totalorder %s1702_s16, 1 }
   0xe   : > { %p1800_p6 = por %p246_p3, %p48_p0  ;;  %p253_p7 = scmp.lt.s32.totalorder %s1702_s16, 3 }
   0xf   : > { %s2303_s1 = sld [smem:[#allocation14_spill]]  ;;  %s1704_s23 = smov [#allocation7]  }
  0x10   : > { %p1808_p8 = pnand %p1378_p5, %p253_p7  ;;  %s266_s24 = sshll.u32 %s1704_s23, 4  ;;  %s267_s24 = int_to_ptr.vmem [resolvable:$true] %s266_s24 }
  0x11   : > { %s287_s27 = sshll.u32 %s2293_s5, 4  ;;  %s2298_s28 = smov 128   ;;  %s288_s27 = int_to_ptr.hbm [resolvable:$true] %s287_s27 }
  0x12   : > { %p1434_p9 = pneg %p1808_p8  ;;  %s2299_s29 = smov 8  }
  0x13   : > { %s1707_s30 = smov [#allocation9]   ;;  %s1827_s11 = sadd.s32 1, %s1702_s16  }
  0x14   : > { %p1435_p10 = pnand %p1434_p9, %p49_p1  ;;  %s289_s10 = sshll.u32 %s1707_s30, 4  ;;  %s290_s10 = int_to_ptr.vmem [resolvable:$true] %s289_s10 }
  0x15   : > { %s264_s21 = sshll.u32 %s2303_s1, 4  ;;  %s35_s12 = sadd.s32 1, %s1698_s15  ;;  %s265_s21 = int_to_ptr.hbm [resolvable:$true] %s264_s21 }
  0x16   : > { %1437 = dma.hbm_to_vmem [thread:$0]  (!%p1435_p10), %s265_s21, 512, %s267_s24, [#allocation8], %s2298_s28, %s2298_s28, %s2299_s29  }
  0x17   : > { %1440 = dma.hbm_to_vmem [thread:$0]  (!%p1435_p10), %s288_s27, 512, %s290_s10, [#allocation8], %s2298_s28, %s2298_s28, %s2299_s29  }
  0x18   : > { %s32_s8 = ssub.s32 %s1702_s16, %s1827_s11  ;;  %p42_p12 = scmp.ne.s32.totalorder %s1698_s15, %s1694_s14 }
  0x19   : > { %p33_p13 = scmp.eq.s32.totalorder %s32_s8, 0  ;;  %p43_p0 = scmp.eq.s32.totalorder %s1702_s16, 0 }
  0x1a   : > { %p1837_p3 = por %p240_p2, %p42_p12  ;;  %p1451_p5 = scmp.lt.s32.totalorder %s1702_s16, 2 }
  0x1b   : > { %s1843_s20 = scalar_select %p33_p13, %s1698_s15, %s35_s12  }
  0x1c   : > { %p44_p7 = por %p43_p0, %p42_p12  ;;  %s312_s21 = sand.u32 1, %s1698_s15  }
  0x1d   : > { %s1382_s23 = sshll.u32 %s312_s21, 7  ;;  %s1409_s24 = sshll.u32 %s1702_s16, 7 }
  0x1e   : > { %s321_s27 = scalar_lea.hbm %s2288_s0, %s1409_s24  ;;  %s316_s30 = scalar_lea.vmem [#allocation4], %s1382_s23 }
  0x1f   : > { %s324_s10 = sshll.u32 %s316_s30, 4  ;;  %s322_s8 = sshll.u32 %s321_s27, 4  ;;  %s325_s10 = int_to_ptr.vmem [resolvable:$true] %s324_s10  ;;  %s323_s8 = int_to_ptr.hbm [resolvable:$true] %s322_s8 }
  0x20   : > { %p1850_p2 = pnand %p1451_p5, %p44_p7  ;;  %s313_s12 = scalar_lea.sflag [#allocation5], %s312_s21 }
  0x21   : > { %s1602_s29 = sshra.s32 %s323_s8, 4  ;;  %s1609_s25 = scalar_lea.hbm %s2288_s0, 256  ;;  %s1603_s29 = int_to_ptr.hbm [resolvable:$true] %s1602_s29 }
  0x22   : > { %s1604_s1 = scalar_lea.hbm %s1603_s29, 128  ;;  %p1606_p10 = pneg %p1850_p2 }
  0x23   : > { %p1605_p9 = scmp.ne.s32.totalorder %s1603_s29, %s1604_s1  ;;  %p1610_p0 = scmp.lt.s32.totalorder %s1603_s29, %s2288_s0 }
  0x24   : > { %p1611_p5 = scmp.lt.s32.totalorder %s1609_s25, %s1604_s1 }
  0x25   : > { %p1607_p12 = pnand %p1606_p10, %p1605_p9 }
  0x26   : > { %p1612_p7 = por %p1611_p5, %p1610_p0 }
  0x27   : > { %p1608_p13 = pneg %p1607_p12 }
  0x29   : > { %p1613_p11 = pnand %p1612_p7, %p1608_p13 }
  0x2b   : > { %1616 = shalt.err (!%p1613_p11)
}
  0x2c   : > { %s2307_s21 = smov 8   ;;  %s2308_s30 = smov 128  }
  0x2d   : > { %1444 = dma.hbm_to_vmem [thread:$0]  (!%p1850_p2), %s323_s8, 2048, %s325_s10, %s313_s12, %s2308_s30, %s2308_s30, %s2307_s21  }
  0x2e   : > { %336 = sbr.rel (%p1808_p8) target bundleno = 1359 (0x54f), region = 56  ;;  %s1870_s24 = sand.u32 (!%p1808_p8), 1, %s1694_s14  }
  0x2f   : > { %s1386_s29 = sshll.u32 (!%p1808_p8), %s1870_s24, 7  ;;  %s339_s1 = scalar_lea.sflag (!%p1808_p8), [#allocation5], %s1870_s24 }
  0x30   : > { %s1874_s23 = scalar_lea.vmem (!%p1808_p8), [#allocation4], %s1386_s29 }
  0x33   : > { %1677 = dma.done.wait (%p1795_p4), %s339_s1, 2048  }
  0x34   : > { %1679 = vsyncadd (%p1795_p4), %s339_s1, 4294965248 }
  0x35   : > { %1681 = dma.done.wait (%p49_p1), [#allocation8], 1024  }
  0x36   : > { %1683 = vsyncadd (%p49_p1), [#allocation8], 4294966272  ;;  %v407_v0 = vld [vmem:[#allocation7 + $0x18] sm:$0xff]  ;;  %v406_v1 = vld [vmem:[#allocation7 + $0x10] sm:$0xff]  ;;  %vm412_vm0 = vcmask 261120   ;;  %s610_s8 = sld [smem:[#allocation2]]  ;;  %s1288_s1 = scalar_lea.hbm %s2297_s9, %s1786_s4 }
  0x37   : > { %473 = vmatpush.msra.mxu0 %v407_v0  ;;  %1411 = vmatpush.msra.mxu2 %v407_v0  ;;  %v405_v2 = vld [vmem:[#allocation7 + $0x8] sm:$0xff]  ;;  %v404_v3 = vld [vmem:[#allocation7] sm:$0xff]  ;;  %v1888_v5 = vld [vmem:[%s1874_s23 + $0x30] sm:$0xff]  ;;  %vm662_vm1 = vcmask 1041409   ;;  %vm664_vm2 = vcmask 1042434   ;;  %vm666_vm3 = vcmask 1043459  }
  0x38   : > { %1412 = vmatpush.msra.mxu3 %v407_v0  ;;  %1410 = vmatpush.msra.mxu1 %v407_v0  ;;  %v1885_v4 = vld [vmem:[%s1874_s23] sm:$0xff]  ;;  %v399_v6 = vld [vmem:[%s1874_s23 + $0x58] sm:$0xff]  ;;  %v1892_v7 = vld [vmem:[%s1874_s23 + $0x28] sm:$0xff]  ;;  %vm668_vm4 = vcmask 1044484   ;;  %vm670_vm5 = vcmask 1045509   ;;  %vm672_vm6 = vcmask 1046534  }
  0x39   : > { %474 = vmatpush.msra.mxu0 %v406_v1  ;;  %1414 = vmatpush.msra.mxu2 %v406_v1  ;;  %v1902_v8 = vld [vmem:[%s1874_s23 + $0x8] sm:$0xff]  ;;  %v1905_v9 = vld [vmem:[%s1874_s23 + $0x38] sm:$0xff]  ;;  %v400_v10 = vld [vmem:[%s1874_s23 + $0x60] sm:$0xff]  ;;  %vm674_vm7 = vcmask 1047559   ;;  %vm685_vm8 = vcmask 64512   ;;  %s1241_s21 = sld [smem:[#allocation3]] }
  0x3a   : > { %1415 = vmatpush.msra.mxu3 %v406_v1  ;;  %1413 = vmatpush.msra.mxu1 %v406_v1  ;;  %v1914_v11 = vld [vmem:[%s1874_s23 + $0x10] sm:$0xff]  ;;  %v1917_v12 = vld [vmem:[%s1874_s23 + $0x40] sm:$0xff]  ;;  %v401_v13 = vld [vmem:[%s1874_s23 + $0x68] sm:$0xff]  ;;  %s1292_s22 = sshll.u32 %s1288_s1, 4  ;;  %s1280_s28 = scalar_lea.sflag [#allocation6], %s1870_s24  ;;  %s1293_s22 = int_to_ptr.hbm [resolvable:$true] %s1292_s22 }
  0x3b   : > { %475 = vmatpush.msra.mxu0 %v405_v2  ;;  %1417 = vmatpush.msra.mxu2 %v405_v2  ;;  %v1926_v14 = vld [vmem:[%s1874_s23 + $0x18] sm:$0xff]  ;;  %v397_v15 = vld [vmem:[%s1874_s23 + $0x48] sm:$0xff]  ;;  %v402_v16 = vld [vmem:[%s1874_s23 + $0x70] sm:$0xff]  ;;  %s1646_s10 = sshra.s32 %s1293_s22, 4  ;;  %s1652_s4 = scalar_lea.hbm %s2297_s9, 2  ;;  %s1647_s10 = int_to_ptr.hbm [resolvable:$true] %s1646_s10 }
  0x3c   : > { %1418 = vmatpush.msra.mxu3 %v405_v2  ;;  %1416 = vmatpush.msra.mxu1 %v405_v2  ;;  %v1935_v17 = vld [vmem:[%s1874_s23 + $0x20] sm:$0xff]  ;;  %v1938_v18 = vld [vmem:[%s1874_s23 + $0x50] sm:$0xff]  ;;  %v403_v19 = vld [vmem:[%s1874_s23 + $0x78] sm:$0xff]  ;;  %p1653_p11 = scmp.lt.s32.totalorder %s1647_s10, %s2297_s9 }
  0x3d   : > { %476 = vmatpush.msra.mxu0 %v404_v3  ;;  %1420 = vmatpush.msra.mxu2 %v404_v3  ;;  %v1949_v20 = vld [vmem:[%s2290_s2] ss:$0 sm:$0xff] }
  0x3e   : > { %1389 = vmatmul.msk.f32.vlgmr.msra.gmra.mxu0 %vm412_vm0, %v1885_v4  ;;  %1395 = vmatmul.msk.f32.vlgmr.msra.gmra.mxu2 %vm412_vm0, %v1888_v5  ;;  %v1955_v23 = vld [vmem:[%s2291_s3] ss:$0 sm:$0xff] }
  0x3f   : > { %1421 = vmatpush.msra.mxu3 %v404_v3  ;;  %1419 = vmatpush.msra.mxu1 %v404_v3 }
  0x40   : > { %1400 = vmatmul.msk.f32.vlgmr.msra.gmra.mxu3 %vm412_vm0, %v399_v6  ;;  %1394 = vmatmul.msk.f32.vlgmr.msra.gmra.mxu1 %vm412_vm0, %v1892_v7 }
  0x46   : > { %1390 = vmatmul.msk.f32.gmra.mxu0 %vm412_vm0, %v1902_v8  ;;  %1396 = vmatmul.msk.f32.gmra.mxu2 %vm412_vm0, %v1905_v9 }
  0x48   : > { %1401 = vmatmul.msk.f32.gmra.mxu3 %vm412_vm0, %v400_v10 }
  0x4e   : > { %1391 = vmatmul.msk.f32.gmra.mxu0 %vm412_vm0, %v1914_v11  ;;  %1397 = vmatmul.msk.f32.gmra.mxu2 %vm412_vm0, %v1917_v12 }
  0x50   : > { %1402 = vmatmul.msk.f32.gmra.mxu3 %vm412_vm0, %v401_v13 }
  0x56   : > { %1392 = vmatmul.msk.f32.gmra.mxu0 %vm412_vm0, %v1926_v14  ;;  %1398 = vmatmul.msk.f32.gmra.mxu2 %vm412_vm0, %v397_v15 }
  0x58   : > { %1403 = vmatmul.msk.f32.gmra.mxu3 %vm412_vm0, %v402_v16 }
  0x5e   : > { %1393 = vmatmul.msk.f32.gmra.mxu0 %vm412_vm0, %v1935_v17  ;;  %1399 = vmatmul.msk.f32.gmra.mxu2 %vm412_vm0, %v1938_v18 }
  0x60   : > { %1404 = vmatmul.msk.f32.gmra.mxu3 %vm412_vm0, %v403_v19 }
  0xbb   : > { %v478_v21 = vpop.f32.mrf.mxu0 }
  0xbc   : > { %v479_v22 = vadd.f32 %v1949_v20, %v478_v21 }
  0xbd   : > { %v493_v24 = vpop.f32.mrf.mxu1 }
  0xbe   : > { %v526_v25 = vmax.f32 %v479_v22, 0.0  ;;  %v494_v26 = vadd.f32 %v1949_v20, %v493_v24 }
  0xc0   : > { %v546_v27 = vmul.f32 %v1955_v23, %v526_v25  ;;  %v531_v28 = vmax.f32 %v494_v26, 0.0 }
  0xc1   : > { %v496_v29 = vpop.f32.mrf.mxu2 }
  0xc2   : > { %v497_v30 = vadd.f32 %v1949_v20, %v496_v29  ;;  %v562_v31 = vsel %vm412_vm0, %v546_v27, 0.0  ;;  %v551_v32 = vmul.f32 %v1955_v23, %v531_v28 }
  0xc3   : > { %v481_v33 = vpop.f32.mrf.mxu0  ;;  %563 = vadd.xlane.f32.xlu0 %v562_v31  ;;  %v511_v34 = vpop.f32.mrf.mxu3 }
  0xc4   : > { %v532_v35 = vmax.f32 %v497_v30, 0.0  ;;  %v577_v36 = vsel %vm412_vm0, %v551_v32, 0.0  ;;  %v482_v37 = vadd.f32 %v1949_v20, %v481_v33  ;;  %v512_v6 = vadd.f32 %v1949_v20, %v511_v34 }
  0xc5   : > { %578 = vadd.xlane.f32.xlu2 %v577_v36 }
  0xc6   : > { %v552_v38 = vmul.f32 %v1955_v23, %v532_v35  ;;  %v527_v41 = vmax.f32 %v482_v37, 0.0  ;;  %v537_v22 = vmax.f32 %v512_v6, 0.0 }
  0xc8   : > { %v580_v39 = vsel %vm412_vm0, %v552_v38, 0.0  ;;  %v547_v48 = vmul.f32 %v1955_v23, %v527_v41  ;;  %v557_v35 = vmul.f32 %v1955_v23, %v537_v22 }
  0xc9   : > { %v499_v40 = vpop.f32.mrf.mxu2 }
  0xca   : > { %v500_v42 = vadd.f32 %v1949_v20, %v499_v40  ;;  %v565_v53 = vsel %vm412_vm0, %v547_v48, 0.0 }
  0xcb   : > { %v484_v43 = vpop.f32.mrf.mxu0  ;;  %581 = vadd.xlane.f32.xlu0 %v580_v39  ;;  %v514_v44 = vpop.f32.mrf.mxu3 }
  0xcc   : > { %v533_v45 = vmax.f32 %v500_v42, 0.0  ;;  %v485_v46 = vadd.f32 %v1949_v20, %v484_v43  ;;  %v515_v0 = vadd.f32 %v1949_v20, %v514_v44  ;;  %v595_v43 = vsel %vm412_vm0, %v557_v35, 0.0 }
  0xce   : > { %v553_v47 = vmul.f32 %v1955_v23, %v533_v45  ;;  %v528_v49 = vmax.f32 %v485_v46, 0.0  ;;  %v538_v16 = vmax.f32 %v515_v0, 0.0 }
  0xd0   : > { %v583_v50 = vsel %vm412_vm0, %v553_v47, 0.0  ;;  %v548_v58 = vmul.f32 %v1955_v23, %v528_v49  ;;  %v558_v31 = vmul.f32 %v1955_v23, %v538_v16 }
  0xd1   : > { %v502_v51 = vpop.f32.mrf.mxu2  ;;  %584 = vadd.xlane.f32.xlu1 %v583_v50 }
  0xd2   : > { %v503_v52 = vadd.f32 %v1949_v20, %v502_v51  ;;  %v568_v61 = vsel %vm412_vm0, %v548_v58, 0.0  ;;  %v598_v40 = vsel %vm412_vm0, %v558_v31, 0.0 }
  0xd3   : > { %v487_v54 = vpop.f32.mrf.mxu0  ;;  %566 = vadd.xlane.f32.xlu0 %v565_v53  ;;  %v517_v55 = vpop.f32.mrf.mxu3 }
  0xd4   : > { %v534_v56 = vmax.f32 %v503_v52, 0.0  ;;  %v488_v57 = vadd.f32 %v1949_v20, %v487_v54  ;;  %v518_v28 = vadd.f32 %v1949_v20, %v517_v55 }
  0xd6   : > { %v554_v59 = vmul.f32 %v1955_v23, %v534_v56  ;;  %v529_v60 = vmax.f32 %v488_v57, 0.0  ;;  %v539_v37 = vmax.f32 %v518_v28, 0.0  ;;  %v644_v56 = vlaneseq }
  0xd7   : > { %v611_v57 = vstv %s610_s8  ;;  %s1648_s8 = scalar_lea.hbm %s1647_s10, 1 }
  0xd8   : > { %v586_v62 = vsel %vm412_vm0, %v554_v59, 0.0  ;;  %v549_v15 = vmul.f32 %v1955_v23, %v529_v60  ;;  %v559_v44 = vmul.f32 %v1955_v23, %v539_v37  ;;  %v2008_v59 = vand.u32 127, %v644_v56  ;;  %p1649_p1 = scmp.ne.s32.totalorder %s1647_s10, %s1648_s8  ;;  %p1654_p2 = scmp.lt.s32.totalorder %s1652_s4, %s1648_s8 }
  0xd9   : > { %v505_v63 = vpop.f32.mrf.mxu2  ;;  %569 = vadd.xlane.f32.xlu1 %v568_v61  ;;  %587 = vadd.xlane.f32.xlu2 %v586_v62 }
  0xda   : > { %v506_v1 = vadd.f32 %v1949_v20, %v505_v63  ;;  %v571_v24 = vsel %vm412_vm0, %v549_v15, 0.0  ;;  %v601_v46 = vsel %vm412_vm0, %v559_v44, 0.0  ;;  %p1650_p4 = pnand %p1649_p1, %p1837_p3  ;;  %p1655_p9 = por %p1654_p2, %p1653_p11 }
  0xdb   : > { %v490_v2 = vpop.f32.mrf.mxu0  ;;  %v520_v3 = vpop.f32.mrf.mxu3 }
  0xdc   : > { %v535_v10 = vmax.f32 %v506_v1, 0.0  ;;  %v491_v13 = vadd.f32 %v1949_v20, %v490_v2  ;;  %v521_v34 = vadd.f32 %v1949_v20, %v520_v3  ;;  %p1651_p8 = pneg %p1650_p4 }
  0xde   : > { %v530_v19 = vmax.f32 %v491_v13, 0.0  ;;  %v555_v21 = vmul.f32 %v1955_v23, %v535_v10  ;;  %v540_v41 = vmax.f32 %v521_v34, 0.0  ;;  %p1656_p10 = pnand %p1655_p9, %p1651_p8 }
  0xe0   : > { %v589_v25 = vsel %vm412_vm0, %v555_v21, 0.0  ;;  %v550_v26 = vmul.f32 %v1955_v23, %v530_v19 }
  0xe1   : > { %v508_v27 = vpop.f32.mrf.mxu2  ;;  %572 = vadd.xlane.f32.xlu1 %v571_v24  ;;  %590 = vadd.xlane.f32.xlu0 %v589_v25 }
  0xe2   : > { %v509_v29 = vadd.f32 %v1949_v20, %v508_v27  ;;  %v574_v30 = vsel %vm412_vm0, %v550_v26, 0.0 }
  0xe3   : > { %575 = vadd.xlane.f32.xlu2 %v574_v30  ;;  %v523_v32 = vpop.f32.mrf.mxu3 }
  0xe4   : > { %v536_v33 = vmax.f32 %v509_v29, 0.0  ;;  %v524_v36 = vadd.f32 %v1949_v20, %v523_v32  ;;  %v560_v20 = vmul.f32 %v1955_v23, %v540_v41 }
  0xe6   : > { %v556_v38 = vmul.f32 %v1955_v23, %v536_v33  ;;  %v541_v39 = vmax.f32 %v524_v36, 0.0  ;;  %v604_v48 = vsel %vm412_vm0, %v560_v20, 0.0 }
  0xe8   : > { %v592_v42 = vsel %vm412_vm0, %v556_v38, 0.0  ;;  %v561_v45 = vmul.f32 %v1955_v23, %v541_v39 }
  0xe9   : > { %593 = vadd.xlane.f32.xlu1 %v592_v42  ;;  %599 = vadd.xlane.f32.xlu0 %v598_v40 }
  0xea   : > { %v607_v47 = vsel %vm412_vm0, %v561_v45, 0.0 }
  0xeb   : > { %596 = vadd.xlane.f32.xlu2 %v595_v43 }
  0xf1   : > { %602 = vadd.xlane.f32.xlu1 %v601_v46  ;;  %608 = vadd.xlane.f32.xlu0 %v607_v47 }
  0xf3   : > { %605 = vadd.xlane.f32.xlu2 %v604_v48 }
 0x136   : > { %v564_v49 = vpop.xlane.xlu0 %563 }
 0x137   : > { %v2010_v60 = vadd.f32 %v611_v57, %v564_v49 }
 0x138   : > { %v579_v51 = vpop.xlane.xlu2 %578 }
 0x139   : > { %v646_v1 = vperm.slane %v2010_v60, %v2008_v59  ;;  %v2020_v3 = vadd.f32 %v611_v57, %v579_v51 }
 0x13b   : > { %v651_v26 = vperm.slane %v2020_v3, %v2008_v59 }
 0x13e   : > { %v582_v50 = vpop.xlane.xlu0 %581 }
 0x13f   : > { %v2022_v10 = vadd.f32 %v611_v57, %v582_v50 }
 0x141   : > { %v652_v27 = vperm.slane %v2022_v10, %v2008_v59 }
 0x144   : > { %v585_v52 = vpop.xlane.xlu1 %584 }
 0x145   : > { %v2029_v19 = vadd.f32 %v611_v57, %v585_v52 }
 0x146   : > { %v567_v53 = vpop.xlane.xlu0 %566 }
 0x147   : > { %v2004_v23 = vadd.f32 %v611_v57, %v567_v53  ;;  %v653_v30 = vperm.slane %v2029_v19, %v2008_v59 }
 0x149   : > { %v647_v61 = vperm.slane %v2004_v23, %v2008_v59 }
 0x14b   : > { %v663_v13 = vsel %vm662_vm1, %v647_v61, %v646_v1 }
 0x14c   : > { %v570_v54 = vpop.xlane.xlu1 %569  ;;  %v588_v55 = vpop.xlane.xlu2 %587 }
 0x14d   : > { %v2006_v58 = vadd.f32 %v611_v57, %v570_v54  ;;  %v2041_v28 = vadd.f32 %v611_v57, %v588_v55 }
 0x14f   : > { %v648_v62 = vperm.slane %v2006_v58, %v2008_v59  ;;  %v654_v39 = vperm.slane %v2041_v28, %v2008_v59 }
 0x151   : > { %v665_v21 = vsel %vm664_vm2, %v648_v62, %v663_v13 }
 0x154   : > { %v573_v63 = vpop.xlane.xlu1 %572  ;;  %v591_v0 = vpop.xlane.xlu0 %590 }
 0x155   : > { %v2018_v2 = vadd.f32 %v611_v57, %v573_v63  ;;  %v2033_v24 = vadd.f32 %v611_v57, %v591_v0 }
 0x156   : > { %v576_v6 = vpop.xlane.xlu2 %575 }
 0x157   : > { %v649_v15 = vperm.slane %v2018_v2, %v2008_v59  ;;  %v2027_v16 = vadd.f32 %v611_v57, %v576_v6  ;;  %v655_v34 = vperm.slane %v2033_v24, %v2008_v59  ;;  %v1708_v6 = vmov 0  }
 0x158   : > { %1495 = vset.pattern.permute.xlu2 %v1708_v6  ;;  %1494 = vset.pattern.permute.xlu1 %v1708_v6 }
 0x159   : > { %v667_v22 = vsel %vm666_vm3, %v649_v15, %v665_v21  ;;  %v650_v25 = vperm.slane %v2027_v16, %v2008_v59  ;;  %v676_v44 = vsel %vm662_vm1, %v655_v34, %v654_v39  ;;  %1493 = vset.pattern.permute.xlu0 %v1708_v6 }
 0x15b   : > { %v669_v29 = vsel %vm668_vm4, %v650_v25, %v667_v22 }
 0x15c   : > { %v594_v31 = vpop.xlane.xlu1 %593  ;;  %v600_v32 = vpop.xlane.xlu0 %599  ;;  %v671_v33 = vsel %vm670_vm5, %v651_v26, %v669_v29 }
 0x15d   : > { %v2049_v35 = vadd.f32 %v611_v57, %v594_v31  ;;  %v673_v36 = vsel %vm672_vm6, %v652_v27, %v671_v33  ;;  %v2060_v43 = vadd.f32 %v611_v57, %v600_v32 }
 0x15e   : > { %v597_v37 = vpop.xlane.xlu2 %596  ;;  %v675_v38 = vsel %vm674_vm7, %v653_v30, %v673_v36 }
 0x15f   : > { %v656_v40 = vperm.slane %v2049_v35, %v2008_v59  ;;  %v2057_v41 = vadd.f32 %v611_v57, %v597_v37  ;;  %v686_v42 = vsel %vm685_vm8, %v675_v38, -inf  ;;  %v658_v46 = vperm.slane %v2060_v43, %v2008_v59 }
 0x160   : > { %687 = vmax.xlane.f32.xlu1 %v686_v42 }
 0x161   : > { %v657_v45 = vperm.slane %v2057_v41, %v2008_v59  ;;  %v677_v20 = vsel %vm664_vm2, %v656_v40, %v676_v44 }
 0x163   : > { %v678_v49 = vsel %vm666_vm3, %v657_v45, %v677_v20 }
 0x164   : > { %v603_v47 = vpop.xlane.xlu1 %602  ;;  %v609_v48 = vpop.xlane.xlu0 %608  ;;  %v679_v55 = vsel %vm668_vm4, %v658_v46, %v678_v49 }
 0x165   : > { %v2069_v50 = vadd.f32 %v611_v57, %v603_v47  ;;  %v2071_v51 = vadd.f32 %v611_v57, %v609_v48 }
 0x166   : > { %v606_v52 = vpop.xlane.xlu2 %605 }
 0x167   : > { %v659_v53 = vperm.slane %v2069_v50, %v2008_v59  ;;  %v2075_v54 = vadd.f32 %v611_v57, %v606_v52  ;;  %v661_v56 = vperm.slane %v2071_v51, %v2008_v59 }
 0x169   : > { %v660_v61 = vperm.slane %v2075_v54, %v2008_v59  ;;  %v680_v62 = vsel %vm670_vm5, %v659_v53, %v679_v55 }
 0x16b   : > { %v681_v63 = vsel %vm672_vm6, %v660_v61, %v680_v62 }
 0x16c   : > { %v682_v0 = vsel %vm674_vm7, %v661_v56, %v681_v63 }
 0x16d   : > { %v689_v1 = vsel %vm685_vm8, %v682_v0, -inf }
 0x16e   : > { %690 = vmax.xlane.f32.xlu2 %v689_v1 }
 0x1d3   : > { %v688_v57 = vpop.xlane.xlu1 %687 }
 0x1d4   : > { %v695_v13 = vperm.slane %v688_v57, 1  ;;  %v694_v15 = vperm.slane %v688_v57, 0  ;;  %v696_v21 = vperm.slane %v688_v57, 2  ;;  %v698_v27 = vperm.slane %v688_v57, 4 }
 0x1d5   : > { %v701_v29 = vperm.slane %v688_v57, 7  ;;  %v697_v30 = vperm.slane %v688_v57, 3  ;;  %v700_v38 = vperm.slane %v688_v57, 6  ;;  %v699_v40 = vperm.slane %v688_v57, 5 }
 0x1d6   : > { %v727_v22 = vsub.f32 %v2004_v23, %v695_v13  ;;  %v726_v25 = vsub.f32 %v2010_v60, %v694_v15  ;;  %v728_v26 = vsub.f32 %v2006_v58, %v696_v21  ;;  %v730_v34 = vsub.f32 %v2027_v16, %v698_v27 }
 0x1d7   : > { %v733_v36 = vsub.f32 %v2029_v19, %v701_v29  ;;  %v729_v37 = vsub.f32 %v2018_v2, %v697_v30  ;;  %v732_v16 = vsub.f32 %v2022_v10, %v700_v38  ;;  %v731_v19 = vsub.f32 %v2020_v3, %v699_v40 }
 0x1d8   : > { %v744_v31 = vmul.f32 1.442695, %v727_v22  ;;  %v742_v32 = vmul.f32 1.442695, %v726_v25  ;;  %v746_v33 = vmul.f32 1.442695, %v728_v26 }
 0x1d9   : > { %v750_v23 = vmul.f32 1.442695, %v730_v34  ;;  %v756_v60 = vmul.f32 1.442695, %v733_v36  ;;  %v748_v58 = vmul.f32 1.442695, %v729_v37 }
 0x1da   : > { %1500 = vpow2.f32 %v744_v31  ;;  %v754_v46 = vmul.f32 1.442695, %v732_v16  ;;  %v752_v53 = vmul.f32 1.442695, %v731_v19 }
 0x1db   : > { %1502 = vpow2.f32 %v742_v32 }
 0x1dc   : > { %1504 = vpow2.f32 %v746_v33 }
 0x1dd   : > { %1506 = vpow2.f32 %v750_v23 }
 0x1de   : > { %1508 = vpow2.f32 %v756_v60 }
 0x1df   : > { %1510 = vpow2.f32 %v748_v58 }
 0x1e0   : > { %v2092_v39 = vpop.eup %1500  ;;  %1512 = vpow2.f32 %v754_v46 }
 0x1e1   : > { %v2094_v42 = vpop.eup %1502  ;;  %794 = vperm.xlu1 %1494, %v2092_v39   ;;  %v691_v44 = vpop.xlane.xlu2 %690 }
 0x1e2   : > { %v2097_v45 = vpop.eup %1504  ;;  %791 = vperm.xlu0 %1493, %v2094_v42   ;;  %v704_v2 = vperm.slane %v691_v44, 2  ;;  %v703_v47 = vperm.slane %v691_v44, 1  ;;  %v707_v49 = vperm.slane %v691_v44, 5  ;;  %v702_v55 = vperm.slane %v691_v44, 0 }
 0x1e3   : > { %797 = vperm.xlu2 %1495, %v2097_v45   ;;  %v2104_v52 = vpop.eup %1506  ;;  %v706_v63 = vperm.slane %v691_v44, 4  ;;  %v705_v57 = vperm.slane %v691_v44, 3  ;;  %v709_v21 = vperm.slane %v691_v44, 7  ;;  %v708_v26 = vperm.slane %v691_v44, 6 }
 0x1e4   : > { %v736_v20 = vsub.f32 %v2049_v35, %v704_v2  ;;  %v2106_v56 = vpop.eup %1508  ;;  %v735_v3 = vsub.f32 %v2033_v24, %v703_v47  ;;  %v739_v35 = vsub.f32 %v2069_v50, %v707_v49  ;;  %v734_v61 = vsub.f32 %v2041_v28, %v702_v55 }
 0x1e5   : > { %v2109_v10 = vpop.eup %1510  ;;  %v738_v50 = vsub.f32 %v2060_v43, %v706_v63  ;;  %v737_v28 = vsub.f32 %v2057_v41, %v705_v57  ;;  %v741_v43 = vsub.f32 %v2071_v51, %v709_v21  ;;  %v740_v41 = vsub.f32 %v2075_v54, %v708_v26 }
 0x1e6   : > { %v762_v48 = vmul.f32 1.442695, %v736_v20  ;;  %v760_v62 = vmul.f32 1.442695, %v735_v3  ;;  %v768_v0 = vmul.f32 1.442695, %v739_v35  ;;  %v2116_v1 = vpop.eup %1512 }
 0x1e7   : > { %v758_v6 = vmul.f32 1.442695, %v734_v61  ;;  %v766_v15 = vmul.f32 1.442695, %v738_v50  ;;  %v764_v25 = vmul.f32 1.442695, %v737_v28 }
 0x1e8   : > { %1514 = vpow2.f32 %v762_v48  ;;  %v772_v30 = vmul.f32 1.442695, %v741_v43  ;;  %v770_v32 = vmul.f32 1.442695, %v740_v41 }
 0x1e9   : > { %803 = vperm.xlu1 %1494, %v2104_v52   ;;  %1516 = vpow2.f32 %v752_v53 }
 0x1ea   : > { %812 = vperm.xlu0 %1493, %v2106_v56   ;;  %1518 = vpow2.f32 %v760_v62 }
 0x1eb   : > { %800 = vperm.xlu2 %1495, %v2109_v10   ;;  %1520 = vpow2.f32 %v768_v0 }
 0x1ec   : > { %1522 = vpow2.f32 %v758_v6 }
 0x1ed   : > { %1524 = vpow2.f32 %v766_v15 }
 0x1ee   : > { %v2118_v13 = vpop.eup %1514  ;;  %1526 = vpow2.f32 %v764_v25 }
 0x1ef   : > { %v2121_v24 = vpop.eup %1516  ;;  %1528 = vpow2.f32 %v772_v30 }
 0x1f0   : > { %v2127_v22 = vpop.eup %1518  ;;  %1530 = vpow2.f32 %v770_v32 }
 0x1f1   : > { %809 = vperm.xlu1 %1494, %v2116_v1   ;;  %v2129_v27 = vpop.eup %1520 }
 0x1f2   : > { %821 = vperm.xlu0 %1493, %v2118_v13   ;;  %v2132_v29 = vpop.eup %1522 }
 0x1f3   : > { %806 = vperm.xlu2 %1495, %v2121_v24   ;;  %v2138_v31 = vpop.eup %1524 }
 0x1f4   : > { %v2141_v33 = vpop.eup %1526 }
 0x1f5   : > { %v2144_v34 = vpop.eup %1528 }
 0x1f6   : > { %v2147_v51 = vpop.eup %1530 }
 0x1f9   : > { %818 = vperm.xlu1 %1494, %v2127_v22  }
 0x1fa   : > { %830 = vperm.xlu0 %1493, %v2129_v27  }
 0x1fb   : > { %815 = vperm.xlu2 %1495, %v2132_v29  }
 0x201   : > { %827 = vperm.xlu1 %1494, %v2138_v31  }
 0x203   : > { %824 = vperm.xlu2 %1495, %v2141_v33  }
 0x209   : > { %836 = vperm.xlu1 %1494, %v2144_v34  }
 0x20b   : > { %833 = vperm.xlu2 %1495, %v2147_v51  }
 0x23d   : > { %v798_v54 = vpop.permute.xlu2 %797 }
 0x23e   : > { %v840_v16 = vperm.slane %v798_v54, %v2008_v59 }
 0x245   : > { %v801_v36 = vpop.permute.xlu2 %800 }
 0x246   : > { %v841_v20 = vperm.slane %v801_v36, %v2008_v59 }
 0x24d   : > { %v807_v58 = vpop.permute.xlu2 %806 }
 0x24e   : > { %v843_v49 = vperm.slane %v807_v58, %v2008_v59 }
 0x253   : > { %v795_v37 = vpop.permute.xlu1 %794 }
 0x254   : > { %v792_v23 = vpop.permute.xlu0 %791  ;;  %v839_v38 = vperm.slane %v795_v37, %v2008_v59 }
 0x255   : > { %v838_v60 = vperm.slane %v792_v23, %v2008_v59  ;;  %v816_v55 = vpop.permute.xlu2 %815 }
 0x256   : > { %v846_v28 = vperm.slane %v816_v55, %v2008_v59 }
 0x257   : > { %v854_v40 = vsel %vm662_vm1, %v839_v38, %v838_v60 }
 0x258   : > { %v855_v2 = vsel %vm664_vm2, %v840_v16, %v854_v40 }
 0x259   : > { %v856_v46 = vsel %vm666_vm3, %v841_v20, %v855_v2 }
 0x25b   : > { %v804_v44 = vpop.permute.xlu1 %803 }
 0x25c   : > { %v842_v19 = vperm.slane %v804_v44, %v2008_v59  ;;  %v813_v47 = vpop.permute.xlu0 %812 }
 0x25d   : > { %v845_v35 = vperm.slane %v813_v47, %v2008_v59  ;;  %v825_v15 = vpop.permute.xlu2 %824 }
 0x25e   : > { %v857_v48 = vsel %vm668_vm4, %v842_v19, %v856_v46  ;;  %v849_v41 = vperm.slane %v825_v15, %v2008_v59 }
 0x25f   : > { %v858_v61 = vsel %vm670_vm5, %v843_v49, %v857_v48 }
 0x263   : > { %v810_v53 = vpop.permute.xlu1 %809 }
 0x264   : > { %v844_v3 = vperm.slane %v810_v53, %v2008_v59  ;;  %v822_v6 = vpop.permute.xlu0 %821 }
 0x265   : > { %v848_v25 = vperm.slane %v822_v6, %v2008_v59  ;;  %v834_v37 = vpop.permute.xlu2 %833 }
 0x266   : > { %v859_v62 = vsel %vm672_vm6, %v844_v3, %v858_v61  ;;  %v852_v60 = vperm.slane %v834_v37, %v2008_v59 }
 0x267   : > { %v860_v63 = vsel %vm674_vm7, %v845_v35, %v859_v62 }
 0x268   : > { %v870_v0 = vsel %vm685_vm8, %v860_v63, 0.0 }
 0x269   : > { %871 = vadd.xlane.f32.xlu0 %v870_v0 }
 0x26b   : > { %v819_v57 = vpop.permute.xlu1 %818 }
 0x26c   : > { %v847_v50 = vperm.slane %v819_v57, %v2008_v59  ;;  %v831_v32 = vpop.permute.xlu0 %830 }
 0x26d   : > { %v851_v23 = vperm.slane %v831_v32, %v2008_v59 }
 0x26e   : > { %v861_v21 = vsel %vm662_vm1, %v847_v50, %v846_v28 }
 0x26f   : > { %v862_v26 = vsel %vm664_vm2, %v848_v25, %v861_v21 }
 0x270   : > { %v863_v54 = vsel %vm666_vm3, %v849_v41, %v862_v26 }
 0x273   : > { %v828_v43 = vpop.permute.xlu1 %827 }
 0x274   : > { %v850_v30 = vperm.slane %v828_v43, %v2008_v59 }
 0x276   : > { %v864_v36 = vsel %vm668_vm4, %v850_v30, %v863_v54 }
 0x277   : > { %v865_v38 = vsel %vm670_vm5, %v851_v23, %v864_v36 }
 0x278   : > { %v866_v44 = vsel %vm672_vm6, %v852_v60, %v865_v38 }
 0x27b   : > { %v837_v58 = vpop.permute.xlu1 %836 }
 0x27c   : > { %v853_v40 = vperm.slane %v837_v58, %v2008_v59 }
 0x27e   : > { %v867_v16 = vsel %vm674_vm7, %v853_v40, %v866_v44 }
 0x27f   : > { %v873_v2 = vsel %vm685_vm8, %v867_v16, 0.0 }
 0x280   : > { %874 = vadd.xlane.f32.xlu2 %v873_v2 }
 0x2dc   : > { %v872_v19 = vpop.xlane.xlu0 %871 }
 0x2dd   : > { %1532 = vrcp.f32 %v872_v19  ;;  %v887_v48 = vand.u32 2147483648, %v872_v19  ;;  %v885_v53 = vand.u32 2147483647, %v872_v19  ;;  %vm881_vm10 = vweird.f32 %v872_v19 }
 0x2df   : > { %v888_v59 = vor.u32 1.1754944e-38, %v887_v48  ;;  %vm886_vm12 = vcmp.eq.f32.partialorder %v885_v53, 8.507059e+37 }
 0x2e3   : > { %v1533_v20 = vpop.eup %1532 }
 0x2e4   : > { %v877_v46 = vmul.f32 %v1533_v20, %v872_v19  ;;  %vm882_vm9 = vweird.f32 %v1533_v20 }
 0x2e5   : > { %vm883_vm11 = vmor %vm881_vm10, %vm882_vm9 }
 0x2e6   : > { %v878_v47 = vsub.f32 1.0, %v877_v46 }
 0x2e8   : > { %v879_v49 = vmul.f32 %v1533_v20, %v878_v47 }
 0x2ea   : > { %v880_v55 = vadd.f32 %v1533_v20, %v879_v49 }
 0x2ec   : > { %v884_v3 = vsel %vm883_vm11, %v1533_v20, %v880_v55 }
 0x2ed   : > { %v889_v35 = vsel %vm886_vm12, %v888_v59, %v884_v3 }
 0x2ee   : > { %v913_v61 = vperm.slane %v889_v35, 7  ;;  %v912_v62 = vperm.slane %v889_v35, 6  ;;  %v906_v63 = vperm.slane %v889_v35, 0  ;;  %v907_v28 = vperm.slane %v889_v35, 1 }
 0x2ef   : > { %v908_v43 = vperm.slane %v889_v35, 2  ;;  %v909_v23 = vperm.slane %v889_v35, 3  ;;  %v910_v44 = vperm.slane %v889_v35, 4 }
 0x2f0   : > { %v945_v0 = vmul.f32 %v2106_v56, %v913_v61  ;;  %v944_v6 = vmul.f32 %v2116_v1, %v912_v62  ;;  %v938_v57 = vmul.f32 %v2094_v42, %v906_v63  ;;  %v939_v15 = vmul.f32 %v2092_v39, %v907_v28  ;;  %v1165_v61 = vld [vmem:[#allocation9 + $0x18] sm:$0xff] }
 0x2f1   : > { %v940_v42 = vmul.f32 %v2097_v45, %v908_v43  ;;  %v941_v58 = vmul.f32 %v2109_v10, %v909_v23  ;;  %v942_v19 = vmul.f32 %v2104_v52, %v910_v44  ;;  %1216 = vmatpush.msrb.mxu1 %v1165_v61 }
 0x2f2   : > { %991 = vperm.xlu0 %1493, %v945_v0   ;;  %986 = vperm.xlu2 %1495, %v944_v6  }
 0x2f3   : > { %956 = vperm.xlu1 %1494, %v938_v57   ;;  %v875_v50 = vpop.xlane.xlu2 %874 }
 0x2f4   : > { %1534 = vrcp.f32 %v875_v50  ;;  %v901_v41 = vand.u32 2147483648, %v875_v50  ;;  %v899_v56 = vand.u32 2147483647, %v875_v50  ;;  %vm895_vm14 = vweird.f32 %v875_v50 }
 0x2f6   : > { %v902_v32 = vor.u32 1.1754944e-38, %v901_v41  ;;  %vm900_vm8 = vcmp.eq.f32.partialorder %v899_v56, 8.507059e+37 }
 0x2fa   : > { %v1535_v21 = vpop.eup %1534 }
 0x2fb   : > { %v891_v25 = vmul.f32 %v1535_v21, %v875_v50  ;;  %961 = vperm.xlu1 %1494, %v939_v15   ;;  %vm896_vm13 = vweird.f32 %v1535_v21  ;;  %v1163_v50 = vld [vmem:[#allocation9 + $0x8] sm:$0xff] }
 0x2fc   : > { %vm897_vm15 = vmor %vm895_vm14, %vm896_vm13 }
 0x2fd   : > { %v892_v26 = vsub.f32 1.0, %v891_v25 }
 0x2ff   : > { %v893_v30 = vmul.f32 %v1535_v21, %v892_v26 }
 0x301   : > { %v894_v1 = vadd.f32 %v1535_v21, %v893_v30 }
 0x303   : > { %v898_v54 = vsel %vm897_vm15, %v1535_v21, %v894_v1  ;;  %966 = vperm.xlu1 %1494, %v940_v42   ;;  %v1162_v21 = vld [vmem:[#allocation9] sm:$0xff] }
 0x304   : > { %v903_v36 = vsel %vm900_vm8, %v902_v32, %v898_v54 }
 0x305   : > { %v916_v39 = vperm.slane %v903_v36, 2  ;;  %v918_v37 = vperm.slane %v903_v36, 4  ;;  %v919_v40 = vperm.slane %v903_v36, 5  ;;  %v921_v45 = vperm.slane %v903_v36, 7 }
 0x306   : > { %v914_v20 = vperm.slane %v903_v36, 0  ;;  %v915_v46 = vperm.slane %v903_v36, 1  ;;  %v920_v48 = vperm.slane %v903_v36, 6 }
 0x307   : > { %v948_v38 = vmul.f32 %v2118_v13, %v916_v39  ;;  %v950_v60 = vmul.f32 %v2138_v31, %v918_v37  ;;  %v951_v16 = vmul.f32 %v2129_v27, %v919_v40  ;;  %v953_v2 = vmul.f32 %v2144_v34, %v921_v45 }
 0x308   : > { %v911_v13 = vperm.slane %v889_v35, 5  ;;  %v946_v10 = vmul.f32 %v2132_v29, %v914_v20  ;;  %v947_v47 = vmul.f32 %v2127_v22, %v915_v46  ;;  %v917_v27 = vperm.slane %v903_v36, 3 }
 0x309   : > { %1006 = vperm.xlu0 %1493, %v948_v38   ;;  %1016 = vperm.xlu2 %1495, %v950_v60   ;;  %v952_v52 = vmul.f32 %v2147_v51, %v920_v48 }
 0x30a   : > { %v943_v31 = vmul.f32 %v2121_v24, %v911_v13  ;;  %v949_v34 = vmul.f32 %v2141_v33, %v917_v27 }
 0x30b   : > { %971 = vperm.xlu1 %1494, %v941_v58  }
 0x311   : > { %1021 = vperm.xlu0 %1493, %v951_v16   ;;  %1031 = vperm.xlu2 %1495, %v953_v2  }
 0x313   : > { %976 = vperm.xlu1 %1494, %v942_v19  }
 0x31b   : > { %981 = vperm.xlu1 %1494, %v943_v31  }
 0x323   : > { %996 = vperm.xlu1 %1494, %v946_v10  }
 0x32b   : > { %1001 = vperm.xlu1 %1494, %v947_v47  }
 0x333   : > { %1011 = vperm.xlu1 %1494, %v949_v34  }
 0x33b   : > { %1026 = vperm.xlu1 %1494, %v952_v52  }
 0x34c   : > { %v987_v3 = vpop.permute.xlu2 %986 }
 0x34d   : > { %v1040_v63 = vmul.f32 %v987_v3, %v1888_v5 }
 0x34f   : > { %v1092_v15 = vsel %vm412_vm0, %v1040_v63, 0.0 }
 0x350   : > { %v1093_v30 = vrot.slane %v1092_v15, 4 }
 0x352   : > { %v1094_v39 = vadd.f32 %v1093_v30, %v1092_v15  ;;  %v1537_v30 = vld [vmem:[%s1874_s23 + $0x48] sm:$0xff] }
 0x354   : > { %v1095_v16 = vrot.slane %v1094_v39, 2 }
 0x356   : > { %v1096_v34 = vadd.f32 %v1095_v16, %v1094_v39 }
 0x364   : > { %v992_v62 = vpop.permute.xlu0 %991 }
 0x365   : > { %v957_v49 = vpop.permute.xlu1 %956 }
 0x366   : > { %v1034_v59 = vmul.f32 %v957_v49, %v1885_v4  ;;  %v1041_v4 = vmul.f32 %v992_v62, %v1905_v9 }
 0x368   : > { %v1050_v0 = vsel %vm412_vm0, %v1034_v59, 0.0  ;;  %v1099_v5 = vsel %vm412_vm0, %v1041_v4, 0.0 }
 0x369   : > { %v1051_v28 = vrot.slane %v1050_v0, 4  ;;  %v1100_v42 = vrot.slane %v1099_v5, 4 }
 0x36b   : > { %v1052_v56 = vadd.f32 %v1051_v28, %v1050_v0  ;;  %v1101_v60 = vadd.f32 %v1100_v42, %v1099_v5  ;;  %v1536_v28 = vld [vmem:[%s1874_s23 + $0x60] sm:$0xff]  ;;  %v1538_v42 = vld [vmem:[%s1874_s23 + $0x68] sm:$0xff] }
 0x36d   : > { %v962_v53 = vpop.permute.xlu1 %961  ;;  %v1053_v37 = vrot.slane %v1052_v56, 2  ;;  %v1102_v20 = vrot.slane %v1101_v60, 2 }
 0x36e   : > { %v1035_v55 = vmul.f32 %v962_v53, %v1902_v8  ;;  %v1017_v53 = vpop.permute.xlu2 %1016 }
 0x36f   : > { %v1054_v2 = vadd.f32 %v1053_v37, %v1052_v56 }
 0x370   : > { %v1057_v35 = vsel %vm412_vm0, %v1035_v55, 0.0  ;;  %v1103_v55 = vadd.f32 %v1102_v20, %v1101_v60 }
 0x371   : > { %v1058_v6 = vrot.slane %v1057_v35, 4  ;;  %v1055_v48 = vrot.slane %v1054_v2, 1 }
 0x372   : > { %v1104_v0 = vrot.slane %v1103_v55, 1 }
 0x373   : > { %v1059_v25 = vadd.f32 %v1058_v6, %v1057_v35  ;;  %v1097_v35 = vrot.slane %v1096_v34, 1 }
 0x375   : > { %v967_v24 = vpop.permute.xlu1 %966  ;;  %v1060_v32 = vrot.slane %v1059_v25, 2 }
 0x376   : > { %v1036_v29 = vmul.f32 %v967_v24, %v1914_v11  ;;  %v1164_v11 = vld [vmem:[#allocation9 + $0x10] sm:$0xff] }
 0x377   : > { %1217 = vmatpush.msrb.mxu1 %v1164_v11  ;;  %v1061_v58 = vadd.f32 %v1060_v32, %v1059_v25 }
 0x378   : > { %v1064_v51 = vsel %vm412_vm0, %v1036_v29, 0.0 }
 0x379   : > { %v1065_v57 = vrot.slane %v1064_v51, 4  ;;  %1218 = vmatpush.msrb.mxu1 %v1163_v50  ;;  %v1062_v10 = vrot.slane %v1061_v58, 1 }
 0x37b   : > { %1219 = vmatpush.msrb.mxu1 %v1162_v21  ;;  %v1066_v43 = vadd.f32 %v1065_v57, %v1064_v51  ;;  %v1007_v27 = vpop.permute.xlu0 %1006  ;;  %v1063_v29 = vadd.f32 %v1062_v10, %v1061_v58  ;;  %v1098_v57 = vadd.f32 %v1097_v35, %v1096_v34 }
 0x37c   : > { %v1044_v51 = vmul.f32 %v1007_v27, %v1938_v18 }
 0x37d   : > { %v972_v22 = vpop.permute.xlu1 %971  ;;  %v1067_v36 = vrot.slane %v1066_v43, 2 }
 0x37e   : > { %v1037_v33 = vmul.f32 %v972_v22, %v1926_v14  ;;  %v1120_v15 = vsel %vm412_vm0, %v1044_v51, 0.0 }
 0x37f   : > { %v1068_v44 = vadd.f32 %v1067_v36, %v1066_v43 }
 0x380   : > { %v1071_v8 = vsel %vm412_vm0, %v1037_v33, 0.0  ;;  %v1056_v33 = vadd.f32 %v1055_v48, %v1054_v2 }
 0x381   : > { %v1072_v14 = vrot.slane %v1071_v8, 4  ;;  %v1069_v47 = vrot.slane %v1068_v44, 1 }
 0x383   : > { %v1073_v1 = vadd.f32 %v1072_v14, %v1071_v8  ;;  %v1070_v3 = vadd.f32 %v1069_v47, %v1068_v44  ;;  %v1186_v8 = vsel %vm662_vm1, %v1063_v29, %v1056_v33  ;;  %v1046_v14 = vmul.f32 %v1536_v28, %v1017_v53  ;;  %v1022_v18 = vpop.permute.xlu0 %1021 }
 0x384   : > { %v1047_v32 = vmul.f32 %v1538_v42, %v1022_v18 }
 0x385   : > { %v977_v26 = vpop.permute.xlu1 %976  ;;  %v1074_v23 = vrot.slane %v1073_v1, 2  ;;  %v1187_v4 = vsel %vm664_vm2, %v1070_v3, %v1186_v8  ;;  %v1134_v36 = vsel %vm412_vm0, %v1046_v14, 0.0 }
 0x386   : > { %v1038_v41 = vmul.f32 %v977_v26, %v1935_v17  ;;  %v1105_v26 = vadd.f32 %v1104_v0, %v1103_v55  ;;  %v1135_v58 = vrot.slane %v1134_v36, 4 }
 0x387   : > { %v1075_v19 = vadd.f32 %v1074_v23, %v1073_v1  ;;  %v1539_v23 = vld [vmem:[%s1874_s23 + $0x78] sm:$0xff] }
 0x388   : > { %v1078_v9 = vsel %vm412_vm0, %v1038_v41, 0.0  ;;  %v1032_v41 = vpop.permute.xlu2 %1031  ;;  %v1136_v10 = vadd.f32 %v1135_v58, %v1134_v36  ;;  %v1499_v58 = vld [vmem:[%s2295_s7] ss:$0 sm:$0xff] }
 0x389   : > { %v1079_v54 = vrot.slane %v1078_v9, 4  ;;  %v1076_v52 = vrot.slane %v1075_v19, 1 }
 0x38b   : > { %v1080_v38 = vadd.f32 %v1079_v54, %v1078_v9  ;;  %v1077_v61 = vadd.f32 %v1076_v52, %v1075_v19  ;;  %v1121_v9 = vrot.slane %v1120_v15, 4 }
 0x38d   : > { %v1081_v40 = vrot.slane %v1080_v38, 2  ;;  %v982_v45 = vpop.permute.xlu1 %981  ;;  %v1188_v50 = vsel %vm666_vm3, %v1077_v61, %v1187_v4  ;;  %v1541_v61 = vld [vmem:[%s1874_s23 + $0x70] sm:$0xff] }
 0x38e   : > { %v1039_v17 = vmul.f32 %v982_v45, %v1892_v7  ;;  %v1141_v45 = vsel %vm412_vm0, %v1047_v32, 0.0 }
 0x38f   : > { %v1082_v13 = vadd.f32 %v1081_v40, %v1080_v38  ;;  %v1049_v38 = vmul.f32 %v1539_v23, %v1032_v41  ;;  %v1122_v40 = vadd.f32 %v1121_v9, %v1120_v15  ;;  %v1498_v23 = vld [vmem:[%s2294_s6] ss:$0 sm:$0xff] }
 0x390   : > { %v1085_v31 = vsel %vm412_vm0, %v1039_v17, 0.0 }
 0x391   : > { %v1086_v46 = vrot.slane %v1085_v31, 4  ;;  %v1083_v24 = vrot.slane %v1082_v13, 1  ;;  %v1155_v16 = vsel %vm412_vm0, %v1049_v38, 0.0 }
 0x392   : > { %v1156_v27 = vrot.slane %v1155_v16, 4 }
 0x393   : > { %v1087_v49 = vadd.f32 %v1086_v46, %v1085_v31  ;;  %v1084_v63 = vadd.f32 %v1083_v24, %v1082_v13  ;;  %v1142_v13 = vrot.slane %v1141_v45, 4  ;;  %v1540_v31 = vld [vmem:[%s1874_s23 + $0x58] sm:$0xff]  ;;  %v1123_v46 = vrot.slane %v1122_v40, 2  ;;  %s386_s23 = scalar_lea.vmem [#allocation10], %s1870_s24 }
 0x394   : > { %v1137_v24 = vrot.slane %v1136_v10, 2  ;;  %s1290_s17 = sshll.u32 %s386_s23, 4  ;;  %s1291_s17 = int_to_ptr.vmem [resolvable:$true] %s1290_s17 }
 0x395   : > { %v1088_v7 = vrot.slane %v1087_v49, 2  ;;  %v997_v59 = vpop.permute.xlu1 %996  ;;  %v1189_v25 = vsel %vm668_vm4, %v1084_v63, %v1188_v50  ;;  %v1124_v55 = vadd.f32 %v1123_v46, %v1122_v40 }
 0x396   : > { %v1042_v22 = vmul.f32 %v997_v59, %v1917_v12  ;;  %v1138_v51 = vadd.f32 %v1137_v24, %v1136_v10 }
 0x397   : > { %v1089_v62 = vadd.f32 %v1088_v7, %v1087_v49  ;;  %v1143_v49 = vadd.f32 %v1142_v13, %v1141_v45  ;;  %v1157_v7 = vadd.f32 %v1156_v27, %v1155_v16  ;;  %v1125_v63 = vrot.slane %v1124_v55, 1 }
 0x398   : > { %v1106_v6 = vsel %vm412_vm0, %v1042_v22, 0.0  ;;  %v1139_v28 = vrot.slane %v1138_v51, 1 }
 0x399   : > { %v1090_v11 = vrot.slane %v1089_v62, 1  ;;  %v1107_v21 = vrot.slane %v1106_v6, 4  ;;  %v1144_v35 = vrot.slane %v1143_v49, 2  ;;  %v1158_v8 = vrot.slane %v1157_v7, 2 }
 0x39a   : > { %v1126_v14 = vadd.f32 %v1125_v63, %v1124_v55  ;;  %v1140_v41 = vadd.f32 %v1139_v28, %v1138_v51 }
 0x39b   : > { %v1091_v12 = vadd.f32 %v1090_v11, %v1089_v62  ;;  %v1108_v39 = vadd.f32 %v1107_v21, %v1106_v6  ;;  %v1145_v50 = vadd.f32 %v1144_v35, %v1143_v49  ;;  %v1159_v21 = vadd.f32 %v1158_v8, %v1157_v7 }
 0x39d   : > { %v1002_v5 = vpop.permute.xlu1 %1001  ;;  %v1190_v43 = vsel %vm670_vm5, %v1091_v12, %v1189_v25  ;;  %v1109_v17 = vrot.slane %v1108_v39, 2 }
 0x39e   : > { %v1043_v56 = vmul.f32 %v1537_v30, %v1002_v5  ;;  %v1191_v1 = vsel %vm672_vm6, %v1098_v57, %v1190_v43  ;;  %v1146_v5 = vrot.slane %v1145_v50, 1 }
 0x39f   : > { %v1192_v54 = vsel %vm674_vm7, %v1105_v26, %v1191_v1  ;;  %v1110_v34 = vadd.f32 %v1109_v17, %v1108_v39 }
 0x3a0   : > { %v1113_v37 = vsel %vm412_vm0, %v1043_v56, 0.0  ;;  %1405 = vmatmul.msk.f32.vlgmr.msrb.gmra.mxu1 %vm412_vm0, %v1192_v54  ;;  %v1160_v56 = vrot.slane %v1159_v21, 1  ;;  %v1147_v42 = vadd.f32 %v1146_v5, %v1145_v50 }
 0x3a1   : > { %v1114_v60 = vrot.slane %v1113_v37, 4  ;;  %v1111_v59 = vrot.slane %v1110_v34, 1 }
 0x3a2   : > { %v1161_v54 = vadd.f32 %v1160_v56, %v1159_v21 }
 0x3a3   : > { %v1115_v44 = vadd.f32 %v1114_v60, %v1113_v37  ;;  %v1112_v11 = vadd.f32 %v1111_v59, %v1110_v34 }
 0x3a5   : > { %v1116_v2 = vrot.slane %v1115_v44, 2  ;;  %v1012_v19 = vpop.permute.xlu1 %1011 }
 0x3a6   : > { %v1045_v20 = vmul.f32 %v1540_v31, %v1012_v19  ;;  %v1242_v31 = vstv %s1241_s21 }
 0x3a7   : > { %v1117_v47 = vadd.f32 %v1116_v2, %v1115_v44 }
 0x3a8   : > { %v1127_v48 = vsel %vm412_vm0, %v1045_v20, 0.0 }
 0x3a9   : > { %v1128_v52 = vrot.slane %v1127_v48, 4  ;;  %v1118_v53 = vrot.slane %v1117_v47, 1 }
 0x3ab   : > { %v1129_v29 = vadd.f32 %v1128_v52, %v1127_v48  ;;  %v1119_v33 = vadd.f32 %v1118_v53, %v1117_v47 }
 0x3ad   : > { %v1130_v3 = vrot.slane %v1129_v29, 2  ;;  %v1027_v22 = vpop.permute.xlu1 %1026  ;;  %v1193_v12 = vsel %vm662_vm1, %v1119_v33, %v1112_v11  ;;  %vm1277_vm1 = vcmask 122880  }
 0x3ae   : > { %v1048_v62 = vmul.f32 %v1541_v61, %v1027_v22  ;;  %v1194_v26 = vsel %vm664_vm2, %v1126_v14, %v1193_v12 }
 0x3af   : > { %v1131_v0 = vadd.f32 %v1130_v3, %v1129_v29 }
 0x3b0   : > { %v1148_v6 = vsel %vm412_vm0, %v1048_v62, 0.0 }
 0x3b1   : > { %v1132_v4 = vrot.slane %v1131_v0, 1  ;;  %v1149_v57 = vrot.slane %v1148_v6, 4 }
 0x3b3   : > { %v1133_v15 = vadd.f32 %v1132_v4, %v1131_v0  ;;  %v1150_v18 = vadd.f32 %v1149_v57, %v1148_v6 }
 0x3b5   : > { %v1151_v25 = vrot.slane %v1150_v18, 2  ;;  %v1195_v43 = vsel %vm666_vm3, %v1133_v15, %v1194_v26 }
 0x3b6   : > { %v1196_v9 = vsel %vm668_vm4, %v1140_v41, %v1195_v43 }
 0x3b7   : > { %v1152_v30 = vadd.f32 %v1151_v25, %v1150_v18  ;;  %v1197_v36 = vsel %vm670_vm5, %v1147_v42, %v1196_v9 }
 0x3b9   : > { %v1153_v1 = vrot.slane %v1152_v30, 1 }
 0x3bb   : > { %v1154_v32 = vadd.f32 %v1153_v1, %v1152_v30 }
 0x3bd   : > { %v1198_v39 = vsel %vm672_vm6, %v1154_v32, %v1197_v36 }
 0x3be   : > { %v1199_v37 = vsel %vm674_vm7, %v1161_v54, %v1198_v39 }
 0x3bf   : > { %1406 = vmatmul.msk.f32.gmra.mxu1 %vm412_vm0, %v1199_v37 }
 0x41d   : > { %v1221_v38 = vpop.f32.mrf.mxu1 }
 0x41e   : > { %v1222_v60 = vadd.f32 %v1498_v23, %v1221_v38 }
 0x420   : > { %v1227_v40 = vmax.f32 %v1222_v60, 0.0 }
 0x422   : > { %v1233_v45 = vmul.f32 %v1499_v58, %v1227_v40 }
 0x424   : > { %v1235_v44 = vsel %vm412_vm0, %v1233_v45, 0.0 }
 0x425   : > { %1236 = vadd.xlane.f32.xlu0 %v1235_v44 }
 0x43c   : > { %v1224_v17 = vpop.f32.mrf.mxu1 }
 0x43d   : > { %v1225_v16 = vadd.f32 %v1498_v23, %v1224_v17 }
 0x43f   : > { %v1228_v2 = vmax.f32 %v1225_v16, 0.0 }
 0x441   : > { %v1234_v19 = vmul.f32 %v1499_v58, %v1228_v2 }
 0x443   : > { %v1238_v13 = vsel %vm412_vm0, %v1234_v19, 0.0 }
 0x444   : > { %1239 = vadd.xlane.f32.xlu1 %v1238_v13 }
 0x498   : > { %v1237_v20 = vpop.xlane.xlu0 %1236 }
 0x499   : > { %v1243_v10 = vadd.f32 %v1242_v31, %v1237_v20 }
 0x49b   : > { %1245 = vxpose.xlu2.b32.start [1/2] (short) (narrow) %v1243_v10, 8 }
 0x4b7   : > { %v1240_v46 = vpop.xlane.xlu1 %1239 }
 0x4b8   : > { %v1244_v47 = vadd.f32 %v1242_v31, %v1240_v46 }
 0x4ba   : > { %1246 = vxpose.xlu2.b32.end [2/2] (short) (narrow) %v1244_v47, 8 }
 0x54b   : > { %v1261_v27 = vpop.trf.xlu2 }
 0x54c   : > { %1278 = vst.msk [vmem:[%s386_s23] sm:$0x1] %vm1277_vm1, %v1261_v27 }
 0x54d   : > { %1659 = shalt.err (!%p1656_p10)
}
 0x54e   : > { %1432 = dma.vmem_to_hbm [thread:$0]  (%p1837_p3), %s1291_s17, 16, %s1293_s22, %s1280_s28  }
 0x54f PF: > { %s1304_s24 = sand.u32 1, %s1690_s13   ;;  %p2309_p12 = scmp.ge.s32.totalorder %s1702_s16, 2 }
 0x550   : > { %s1305_s21 = scalar_lea.sflag [#allocation6], %s1304_s24 }
 0x551   : > { %p1446_p13 = pnand %p2309_p12, %p1800_p6 }
 0x553   : > { %p1447_p0 = pneg %p1446_p13 }
 0x555   : > { %1685 = dma.done.wait (%p1447_p0), %s1305_s21, 16  }
 0x556   : > { %1687 = vsyncadd (%p1447_p0), %s1305_s21, 4294967280  ;;  %p25_p5 = scmp.ge.s32.totalorder %s1827_s11, 4   ;;  %s2310_s13 = smov %s1694_s14 }
 0x557   : > { %s2311_s14 = smov %s1698_s15  ;;  %s2312_s15 = smov %s1843_s20 }
 0x558   : > { %s2313_s16 = smov %s1827_s11  ;;  %27 = sbr.rel (!%p25_p5) target bundleno = 10 (0xa), region = 109 }
 0x55d   :  { %1310 = vsyncpa [#allocation5], 1 }
 0x55e   :  { %1312 = vsyncpa [#allocation5 + $0x1], 1 }
 0x55f   :  { %1313 = vsyncpa [#allocation8], 1 }
 0x560   :  { %1314 = vsyncpa [#allocation6], 1 }
 0x561   :  { %1316 = vsyncpa [#allocation6 + $0x1], 1 }

</bundles_post_ra>
